<compile_context>
chip_gen: v7x
topology: tpu7x:2x2x1
jax: 0.10.0
libtpu: 0.0.40
codegen_flags: <defaults>
</compile_context>

<pallas_src>
import jax
import jax.numpy as jnp
from jax.experimental import pallas as pl
from jax.experimental.pallas import tpu as pltpu


def mlp_kernel(x_ref, w1_ref, b1_ref, w2_ref, b2_ref, w3_ref, b3_ref, o_ref):
    # Cast x to the MXU input dtype inside the kernel (hides under the DMA).
    x = x_ref[...].astype(w1_ref.dtype)
    # Three MXU matmuls with f32 accumulation; bias add + tanh stay in f32
    # (important on v5e: no bf16 VPU/EUP).
    h1 = jnp.tanh(
        jnp.dot(x, w1_ref[...], preferred_element_type=jnp.float32) + b1_ref[...]
    )
    h2 = jnp.tanh(
        jnp.dot(h1.astype(w2_ref.dtype), w2_ref[...],
                preferred_element_type=jnp.float32) + b2_ref[...]
    )
    out = (
        jnp.dot(h2.astype(w3_ref.dtype), w3_ref[...],
                preferred_element_type=jnp.float32) + b3_ref[...]
    )
    o_ref[...] = out.astype(o_ref.dtype)


def prepare_params(w1, b1, w2, b2, w3, b3, *, compute_dtype=jnp.bfloat16):
    """Once-per-params prep: cast weights to the MXU dtype, zero-pad W3/b3 to a
    lane-dense 128-multiple output width, keep biases in f32.  Hoisted out of the
    hot path so it does not re-execute on every forward call."""
    F, H = w1.shape
    H8 = w2.shape[1]
    O = w3.shape[1]
    O_pad = 128 * pl.cdiv(O, 128)

    w1c = w1.astype(compute_dtype)
    w2c = w2.astype(compute_dtype)
    w3p = jnp.zeros((H8, O_pad), compute_dtype).at[:, :O].set(
        w3.astype(compute_dtype))
    b1c = b1.reshape(1, H).astype(jnp.float32)
    b2c = b2.reshape(1, H8).astype(jnp.float32)
    b3p = jnp.zeros((1, O_pad), jnp.float32).at[:, :O].set(
        b3.reshape(1, O).astype(jnp.float32))
    return (w1c, b1c, w2c, b2c, w3p, b3p), O


def mlp_forward_prepared(x, params, n_output, *, batch_tile=None):
    """Hot path: fused tanh(tanh(x@W1+b1)@W2+b2)@W3+b3 with pre-prepared params."""
    w1c, b1c, w2c, b2c, w3p, b3p = params
    B, F = x.shape
    H = w1c.shape[1]
    H8 = w2c.shape[1]
    O_pad = w3p.shape[1]
    out_dtype = x.dtype

    # Batch tiling: cap at 1024 rows (keeps the double-buffered output tile
    # ~1 MiB -- safe under v5e's 16 MiB scoped VMEM and v7x's 32/64 MiB), and
    # gives grid >= 2 for large B so the "parallel" axis can split across
    # v7x's two TensorCores.  Ragged B handled by row padding.
    if batch_tile is None:
        batch_tile = min(1024, 8 * pl.cdiv(B, 8))
    batch_tile = max(8, (batch_tile // 8) * 8)
    B_pad = batch_tile * pl.cdiv(B, batch_tile)
    xp = x if B_pad == B else jnp.pad(x, ((0, B_pad - B), (0, 0)))
    grid = (B_pad // batch_tile,)

    w_isz = jnp.dtype(w1c.dtype).itemsize
    x_isz = jnp.dtype(x.dtype).itemsize
    o_isz = jnp.dtype(out_dtype).itemsize
    cost = pl.CostEstimate(
        flops=2 * B_pad * (F * H + H * H8 + H8 * O_pad),
        transcendentals=B_pad * (H + H8),
        bytes_accessed=(
            B_pad * F * x_isz                              # x (cast in-kernel)
            + (F * H + H * H8 + H8 * O_pad) * w_isz        # weights
            + (H + H8 + O_pad) * 4                         # f32 biases
            + B_pad * O_pad * o_isz                        # output store
        ),
    )

    out_padded = pl.pallas_call(
        mlp_kernel,
        out_shape=jax.ShapeDtypeStruct((B_pad, O_pad), out_dtype),
        grid_spec=pltpu.PrefetchScalarGridSpec(
            num_scalar_prefetch=0,
            grid=grid,
            in_specs=[
                pl.BlockSpec((batch_tile, F), lambda i: (i, 0)),   # x tile
                pl.BlockSpec((F, H), lambda i: (0, 0)),            # W1 (full)
                pl.BlockSpec((1, H), lambda i: (0, 0)),            # b1
                pl.BlockSpec((H, H8), lambda i: (0, 0)),           # W2 (full)
                pl.BlockSpec((1, H8), lambda i: (0, 0)),           # b2
                pl.BlockSpec((H8, O_pad), lambda i: (0, 0)),       # W3 (padded)
                pl.BlockSpec((1, O_pad), lambda i: (0, 0)),        # b3 (padded)
            ],
            out_specs=pl.BlockSpec((batch_tile, O_pad), lambda i: (i, 0)),
        ),
        compiler_params=pltpu.CompilerParams(
            dimension_semantics=("parallel",),
        ),
        cost_estimate=cost,
    )(xp, w1c, b1c, w2c, b2c, w3p, b3p)

    # Row/lane unpad only -- no dtype cast (kernel already stored out_dtype).
    # TODO(synk): for very large B where output bytes bind, fuse this slice into
    # the consumer or repack 32 rows x 4 cols into a single 128-lane row in-kernel.
    return out_padded[:B, :n_output]


def mlp_forward(x, w1, b1, w2, b2, w3, b3, *, batch_tile=None,
                compute_dtype=jnp.bfloat16):
    """Convenience wrapper matching Net.forward: preps params, then runs the kernel."""
    params, n_output = prepare_params(
        w1, b1, w2, b2, w3, b3, compute_dtype=compute_dtype)
    return mlp_forward_prepared(x, params, n_output, batch_tile=batch_tile)


def init_linear(key, in_dim, out_dim, dtype=jnp.float32):
    # Deterministic init mimicking PyTorch nn.Linear: U(-1/sqrt(in), 1/sqrt(in)).
    kw, kb = jax.random.split(key)
    bound = 1.0 / jnp.sqrt(jnp.asarray(in_dim, dtype))
    w = jax.random.uniform(kw, (in_dim, out_dim), dtype, minval=-bound, maxval=bound)
    b = jax.random.uniform(kb, (1, out_dim), dtype, minval=-bound, maxval=bound)
    return w, b


if __name__ == "__main__":
    # Net(n_feature=32, n_hidden=64, n_output=4) -> hidden2 dim = 64 // 8 = 8
    n_feature, n_hidden, n_output = 32, 64, 4
    batch = 8

    key = jax.random.PRNGKey(0)
    kx, k1, k2, k3 = jax.random.split(key, 4)

    x = jax.random.normal(kx, (batch, n_feature), jnp.float32)
    w1, b1 = init_linear(k1, n_feature, n_hidden)
    w2, b2 = init_linear(k2, n_hidden, n_hidden // 8)
    w3, b3 = init_linear(k3, n_hidden // 8, n_output)

    # Pure-JAX reference (same semantics as the PyTorch forward), in f32.
    ref = jnp.tanh(x @ w1 + b1)
    ref = jnp.tanh(ref @ w2 + b2)
    ref = ref @ w3 + b3

    # 1) Strict check with f32 storage (numerically matches the reference).
    out_f32 = jax.block_until_ready(
        mlp_forward(x, w1, b1, w2, b2, w3, b3, compute_dtype=jnp.float32))
    assert out_f32.shape == (batch, n_output)
    assert jnp.allclose(out_f32, ref, atol=1e-5, rtol=1e-5)

    # 2) Default fast path: bf16 weights / in-kernel bf16 cast of x, f32 accumulation.
    params, n_out = prepare_params(w1, b1, w2, b2, w3, b3)   # once-per-params prep
    out = jax.block_until_ready(mlp_forward_prepared(x, params, n_out))
    assert out.shape == (batch, n_output)
    assert jnp.allclose(out, ref, atol=3e-2, rtol=3e-2)

    # 3) Ragged / larger batch exercising the capped batch_tile + row padding.
    xb = jax.random.normal(kx, (1000, n_feature), jnp.float32)
    refb = jnp.tanh(xb @ w1 + b1)
    refb = jnp.tanh(refb @ w2 + b2)
    refb = refb @ w3 + b3
    outb = jax.block_until_ready(
        mlp_forward_prepared(xb, params, n_out, batch_tile=256))
    assert outb.shape == (1000, n_output)
    assert jnp.allclose(outb, refb, atol=3e-2, rtol=3e-2)

    print("KERNEL_OK")
</pallas_src>

<mosaic_0001>
module attributes {stable_mosaic.version = 11 : i64} {
  func.func @mlp_kernel(%arg0: i32, %arg1: memref<8x32xf32, #tpu.memory_space<vmem>>, %arg2: memref<32x64xf32, #tpu.memory_space<vmem>>, %arg3: memref<1x64xf32, #tpu.memory_space<vmem>>, %arg4: memref<64x8xf32, #tpu.memory_space<vmem>>, %arg5: memref<1x8xf32, #tpu.memory_space<vmem>>, %arg6: memref<8x128xf32, #tpu.memory_space<vmem>>, %arg7: memref<1x128xf32, #tpu.memory_space<vmem>>, %arg8: memref<8x128xf32, #tpu.memory_space<vmem>>) attributes {dimension_semantics = [#tpu.dimension_semantics<parallel>], iteration_bounds = array<i64: 1>, scalar_prefetch = 0 : i64, scratch_operands = 0 : i64, tpu.core_type = #tpu.core_type<tc>, window_params = [{transform_indices = @transform_0, window_bounds = array<i64: 8, 32>}, {pipeline_mode = #tpu.pipeline_mode<synchronous>, transform_indices = @transform_1, window_bounds = array<i64: 32, 64>}, {pipeline_mode = #tpu.pipeline_mode<synchronous>, transform_indices = @transform_2, window_bounds = array<i64: 1, 64>}, {pipeline_mode = #tpu.pipeline_mode<synchronous>, transform_indices = @transform_3, window_bounds = array<i64: 64, 8>}, {pipeline_mode = #tpu.pipeline_mode<synchronous>, transform_indices = @transform_4, window_bounds = array<i64: 1, 8>}, {pipeline_mode = #tpu.pipeline_mode<synchronous>, transform_indices = @transform_5, window_bounds = array<i64: 8, 128>}, {pipeline_mode = #tpu.pipeline_mode<synchronous>, transform_indices = @transform_6, window_bounds = array<i64: 1, 128>}, {transform_indices = @transform_7, window_bounds = array<i64: 8, 128>}]} {
    %c0 = arith.constant 0 : index
    %c0_0 = arith.constant 0 : index
    %0 = vector.load %arg1[%c0, %c0_0] : memref<8x32xf32, #tpu.memory_space<vmem>>, vector<8x32xf32>
    %c0_1 = arith.constant 0 : index
    %c0_2 = arith.constant 0 : index
    %1 = vector.load %arg2[%c0_1, %c0_2] : memref<32x64xf32, #tpu.memory_space<vmem>>, vector<32x64xf32>
    %cst = arith.constant dense<0.000000e+00> : vector<8x64xf32>
    %2 = tpu.matmul %0, %1, %cst {dimension_numbers = #tpu.dot_dimension_numbers<[1], [0], [0], [1], [0, 0, 1, 1], [], []>} : vector<8x32xf32>, vector<32x64xf32>, vector<8x64xf32> -> vector<8x64xf32>
    %c0_3 = arith.constant 0 : index
    %c0_4 = arith.constant 0 : index
    %3 = vector.load %arg3[%c0_3, %c0_4] : memref<1x64xf32, #tpu.memory_space<vmem>>, vector<1x64xf32>
    %4 = vector.broadcast %3 : vector<1x64xf32> to vector<8x64xf32>
    %5 = arith.addf %2, %4 : vector<8x64xf32>
    %6 = math.tanh %5 : vector<8x64xf32>
    %c0_5 = arith.constant 0 : index
    %c0_6 = arith.constant 0 : index
    %7 = vector.load %arg4[%c0_5, %c0_6] : memref<64x8xf32, #tpu.memory_space<vmem>>, vector<64x8xf32>
    %cst_7 = arith.constant dense<0.000000e+00> : vector<8x8xf32>
    %8 = tpu.matmul %6, %7, %cst_7 {dimension_numbers = #tpu.dot_dimension_numbers<[1], [0], [0], [1], [0, 0, 1, 1], [], []>} : vector<8x64xf32>, vector<64x8xf32>, vector<8x8xf32> -> vector<8x8xf32>
    %c0_8 = arith.constant 0 : index
    %c0_9 = arith.constant 0 : index
    %9 = vector.load %arg5[%c0_8, %c0_9] : memref<1x8xf32, #tpu.memory_space<vmem>>, vector<1x8xf32>
    %10 = vector.broadcast %9 : vector<1x8xf32> to vector<8x8xf32>
    %11 = arith.addf %8, %10 : vector<8x8xf32>
    %12 = math.tanh %11 : vector<8x8xf32>
    %c0_10 = arith.constant 0 : index
    %c0_11 = arith.constant 0 : index
    %13 = vector.load %arg6[%c0_10, %c0_11] : memref<8x128xf32, #tpu.memory_space<vmem>>, vector<8x128xf32>
    %cst_12 = arith.constant dense<0.000000e+00> : vector<8x128xf32>
    %14 = tpu.matmul %12, %13, %cst_12 {dimension_numbers = #tpu.dot_dimension_numbers<[1], [0], [0], [1], [0, 0, 1, 1], [], []>} : vector<8x8xf32>, vector<8x128xf32>, vector<8x128xf32> -> vector<8x128xf32>
    %c0_13 = arith.constant 0 : index
    %c0_14 = arith.constant 0 : index
    %15 = vector.load %arg7[%c0_13, %c0_14] : memref<1x128xf32, #tpu.memory_space<vmem>>, vector<1x128xf32>
    %16 = vector.broadcast %15 : vector<1x128xf32> to vector<8x128xf32>
    %17 = arith.addf %14, %16 : vector<8x128xf32>
    %c0_15 = arith.constant 0 : index
    %c0_16 = arith.constant 0 : index
    %18 = vector.load %arg8[%c0_15, %c0_16] : memref<8x128xf32, #tpu.memory_space<vmem>>, vector<8x128xf32>
    tpu.vector_store %arg8[%c0_15, %c0_16], %17 {strides = array<i32>} : memref<8x128xf32, #tpu.memory_space<vmem>>, vector<8x128xf32>,
    return
  }
  func.func @transform_0(%arg0: i32) -> (i32, i32) {
    %c0_i32 = arith.constant 0 : i32
    %c0_i32_0 = arith.constant 0 : i32
    return %arg0, %c0_i32 : i32, i32
  }
  func.func @transform_1(%arg0: i32) -> (i32, i32) {
    %c0_i32 = arith.constant 0 : i32
    %c0_i32_0 = arith.constant 0 : i32
    %c0_i32_1 = arith.constant 0 : i32
    return %c0_i32, %c0_i32_0 : i32, i32
  }
  func.func @transform_2(%arg0: i32) -> (i32, i32) {
    %c0_i32 = arith.constant 0 : i32
    %c0_i32_0 = arith.constant 0 : i32
    %c0_i32_1 = arith.constant 0 : i32
    return %c0_i32, %c0_i32_0 : i32, i32
  }
  func.func @transform_3(%arg0: i32) -> (i32, i32) {
    %c0_i32 = arith.constant 0 : i32
    %c0_i32_0 = arith.constant 0 : i32
    %c0_i32_1 = arith.constant 0 : i32
    return %c0_i32, %c0_i32_0 : i32, i32
  }
  func.func @transform_4(%arg0: i32) -> (i32, i32) {
    %c0_i32 = arith.constant 0 : i32
    %c0_i32_0 = arith.constant 0 : i32
    %c0_i32_1 = arith.constant 0 : i32
    return %c0_i32, %c0_i32_0 : i32, i32
  }
  func.func @transform_5(%arg0: i32) -> (i32, i32) {
    %c0_i32 = arith.constant 0 : i32
    %c0_i32_0 = arith.constant 0 : i32
    %c0_i32_1 = arith.constant 0 : i32
    return %c0_i32, %c0_i32_0 : i32, i32
  }
  func.func @transform_6(%arg0: i32) -> (i32, i32) {
    %c0_i32 = arith.constant 0 : i32
    %c0_i32_0 = arith.constant 0 : i32
    %c0_i32_1 = arith.constant 0 : i32
    return %c0_i32, %c0_i32_0 : i32, i32
  }
  func.func @transform_7(%arg0: i32) -> (i32, i32) {
    %c0_i32 = arith.constant 0 : i32
    %c0_i32_0 = arith.constant 0 : i32
    return %arg0, %c0_i32 : i32, i32
  }
}

</mosaic_0001>

<bundles_post_ra>
// kernel: tpu_custom_call.1
= control target key start
LH: loop header
LB: loop body
LE: loop exit
PB: predicated region body
PF: predicated region fallthrough
CT: control target
= control target key end

     0   :  { %v408_v3 = vmov 0.0|0.0   ;;  %vm409_vm0 = vmmov 0   ;;  %v410_v6 = vmov 0.0   ;;  %s518_s0 = inlined_call_operand.vmem [shape: f32[8,32], index: 0, kind: input, shape index: {}]   ;;  %s519_s1 = inlined_call_operand.vmem [shape: f32[32,64], index: 1, kind: input, shape index: {}]   ;;  %s520_s2 = inlined_call_operand.vmem [shape: f32[1,64], index: 2, kind: input, shape index: {}]   ;;  %s521_s3 = inlined_call_operand.vmem [shape: f32[64,8], index: 3, kind: input, shape index: {}]   ;;  %s522_s4 = inlined_call_operand.vmem [shape: f32[1,8], index: 4, kind: input, shape index: {}]   ;;  %s523_s5 = inlined_call_operand.vmem [shape: f32[8,128], index: 5, kind: input, shape index: {}]   ;;  %s524_s6 = inlined_call_operand.vmem [shape: f32[1,128], index: 6, kind: input, shape index: {}]   ;;  %s525_s7 = inlined_call_operand.hbm [shape: f32[8,128], index: 7, kind: output, shape index: {}]  }
   0x1   :  { %v28_v0 = vld [vmem:[%s519_s1] sm:$0xff]  ;;  %v29_v1 = vld [vmem:[%s519_s1 + $0x8] sm:$0xff]  ;;  %v30_v2 = vld [vmem:[%s519_s1 + $0x10] sm:$0xff]  ;;  %358 = vmatprep.subr.bf16.mxu0 %v408_v3  ;;  %331 = vmatprep.mubr.msk.f32.mxu0 %vm409_vm0, %v410_v6 }
   0x2   :  { %v359_v4 = vpack.c.bf16 %v29_v1, %v28_v0  ;;  %v31_v5 = vld [vmem:[%s519_s1 + $0x18] sm:$0xff]  ;;  %v114_v7 = vld [vmem:[%s521_s3] sm:$0xff]  ;;  %364 = vmatprep.subr.bf16.mxu1 %v408_v3  ;;  %v115_v8 = vld [vmem:[%s521_s3 + $0x8] sm:$0xff]  ;;  %350 = vmatprep.mubr.msk.f32.mxu1 %vm409_vm0, %v410_v6 }
   0x3   :  { %12 = vsyncpa [#allocation3], 0  ;;  %v362_v9 = vpack.c.bf16 %v31_v5, %v30_v2  ;;  %v365_v10 = vpack.c.bf16 %v115_v8, %v114_v7  ;;  %v27_v11 = vld [vmem:[%s518_s0] sm:$0xff]  ;;  %vm39_vm1 = vcmask 261120   ;;  %v116_v12 = vld [vmem:[%s521_s3 + $0x10] sm:$0xff]  ;;  %vm129_vm2 = vcmask 523264  }
   0x4   :  { %360 = vmatpush3.bf16.msra.mxu0 %v359_v4  ;;  %v117_v13 = vld [vmem:[%s521_s3 + $0x18] sm:$0xff]  ;;  %v118_v15 = vld [vmem:[%s521_s3 + $0x20] sm:$0xff]  ;;  %v119_v16 = vld [vmem:[%s521_s3 + $0x28] sm:$0xff]  ;;  %vm212_vm3 = vcmask 64512   ;;  %s411_s8 = smov [#allocation2]  }
   0x5   :  { %361 = vmatprep.subr.bf16.mxu0 %v408_v3  ;;  %366 = vmatpush3.bf16.msra.mxu1 %v365_v10  ;;  %v368_v14 = vpack.c.bf16 %v117_v13, %v116_v12  ;;  %v371_v17 = vpack.c.bf16 %v119_v16, %v118_v15  ;;  %v120_v18 = vld [vmem:[%s521_s3 + $0x30] sm:$0xff]  ;;  %v121_v19 = vld [vmem:[%s521_s3 + $0x38] sm:$0xff]  ;;  %v301_v21 = vld [vmem:[%s520_s2] ss:$0 sm:$0xff]  ;;  %s293_s9 = sshll.u32 %s411_s8, 4  ;;  %s294_s9 = int_to_ptr.vmem [resolvable:$true] %s293_s9 }
   0x6   :  { %367 = vmatprep.subr.bf16.mxu1 %v408_v3  ;;  %v374_v20 = vpack.c.bf16 %v121_v19, %v120_v18  ;;  %v204_v26 = vld [vmem:[%s523_s5] sm:$0xff]  ;;  %s384_s5 = scalar_lea.vmem %s294_s9, 128  ;;  %p389_p1 = scmp.lt.s32.totalorder %s294_s9, %s294_s9 }
   0x7   :  { %v303_v27 = vld [vmem:[%s522_s4] ss:$0 sm:$0xff]  ;;  %p385_p0 = scmp.ne.s32.totalorder %s294_s9, %s384_s5  ;;  %p390_p2 = scmp.lt.s32.totalorder %s384_s5, %s384_s5 }
   0x8   :  { %363 = vmatpush3.bf16.msra.mxu0 %v362_v9  ;;  %v305_v32 = vld [vmem:[%s524_s6] ss:$0 sm:$0xff] }
   0x9   :  { %353 = vmatprep.subr.mxu0 %v410_v6  ;;  %369 = vmatpush3.bf16.msra.mxu1 %v368_v14  ;;  %p391_p3 = por %p390_p2, %p389_p1 }
   0xa   :  { %370 = vmatprep.subr.bf16.mxu1 %v408_v3 }
   0xb   :  { %332 = vmatmul.mubr.msk.f32.vlgmr.msra.gmra.mrb[0].mxu0 %vm39_vm1, %v27_v11  ;;  %p392_p4 = pnand %p391_p3, %p385_p0 }
   0xc   :  { %355 = vmatprep.mubr.msk.f32.mxu0 %vm409_vm0, %v410_v6  ;;  %354 = vmatpush3.msra.mxu0 %v204_v26 }
   0xd   :  { %372 = vmatpush3.bf16.msra.mxu1 %v371_v17 }
   0xe   :  { %373 = vmatprep.subr.bf16.mxu1 %v408_v3 }
  0x11   :  { %375 = vmatpush3.bf16.msra.mxu1 %v374_v20 }
  0xde   :  { %v109_v22 = vpop.f32.mrb[0].mxu0 }
  0xdf   :  { %v110_v23 = vadd.f32 %v301_v21, %v109_v22  ;;  %v333_v24 = vpop.f32.mrb[1].mxu0 }
  0xe1   :  { %380 = vtanh.f32 %v110_v23 }
  0xeb   :  { %v381_v25 = vpop.eup %380 }
  0xec   :  { %351 = vmatmul.mubr.msk.f32.vlgmr.msra.gmra.mrb[0].mxu1 %vm129_vm2, %v381_v25 }
 0x1bf   :  { %v199_v28 = vpop.f32.mrb[0].mxu1 }
 0x1c0   :  { %v200_v29 = vadd.f32 %v303_v27, %v199_v28  ;;  %v352_v30 = vpop.f32.mrb[1].mxu1 }
 0x1c2   :  { %382 = vtanh.f32 %v200_v29 }
 0x1cc   :  { %v383_v31 = vpop.eup %382 }
 0x1cd   :  { %356 = vmatmul.mubr.msk.f32.vlgmr.msra.gmra.mrb[2].mxu0 %vm212_vm3, %v383_v31 }
 0x2a0   :  { %v282_v33 = vpop.f32.mrb[2].mxu0 }
 0x2a1   :  { %v283_v34 = vadd.f32 %v305_v32, %v282_v33  ;;  %v357_v35 = vpop.f32.mrb[3].mxu0 }
 0x2a3   :  { %286 = vst [vmem:[#allocation2] sm:$0xff] %v283_v34 }
 0x2a4   :  { %395 = shalt.err (!%p392_p4)
}
 0x2a5   :  { %s396_s11 = scalar_lea.hbm %s525_s7, 128 }
 0x2a6   :  { %p397_p5 = scmp.ne.s32.totalorder %s525_s7, %s396_s11  ;;  %p400_p6 = scmp.lt.u32.totalorder %s396_s11, %s525_s7 }
 0x2a8   :  { %p402_p7 = pnand %p400_p6, %p397_p5 }
 0x2aa   :  { %405 = shalt.err (!%p402_p7)
}
 0x2ab   :  { %296 = dma.vmem_to_hbm [thread:$0]  %s294_s9, 128, %s525_s7, [#allocation3]  }
 0x2ac   :  { %406 = dma.done.wait [#allocation3], 128  }
 0x2ad   :  { %407 = vsyncadd [#allocation3], 4294967168 }
 0x2ae   :  { %300 = vsyncpa [#allocation3], 1 }

</bundles_post_ra>
